<compile_context>
chip_gen: v7x
topology: tpu7x:2x2x1
jax: 0.10.0
libtpu: 0.0.40
codegen_flags: <defaults>
</compile_context>

<pallas_src>
import jax
import jax.numpy as jnp
from jax import lax
from jax.experimental import pallas as pl
from jax.experimental.pallas import tpu as pltpu

EPS = 1e-5


# --------------------------------------------------------------------------- #
# Kernel
# --------------------------------------------------------------------------- #
def _bn_kernel(x_ref, gamma_ref, beta_ref, o_ref):
    # x_ref / o_ref: (N, TC, HW) -- channels on sublanes, H*W on lanes.
    # gamma_ref / beta_ref: (TC, 1).
    n, tc, hw = x_ref.shape
    inv_m = 1.0 / float(n * hw)

    # ---- Pass 1: per-channel mean (f32 accumulation). --------------------- #
    x = x_ref[...].astype(jnp.float32)
    mean = jnp.sum(jnp.sum(x, axis=2, keepdims=True),
                   axis=0, keepdims=True) * inv_m                  # (1, TC, 1)

    # ---- Pass 2: centered (two-pass) variance -- re-read the slab so the
    #      whole tile never has to stay live across passes (no vreg spills). - #
    xc = x_ref[...].astype(jnp.float32) - mean
    var = jnp.sum(jnp.sum(xc * xc, axis=2, keepdims=True),
                  axis=0, keepdims=True) * inv_m                   # (1, TC, 1)

    inv_std = lax.rsqrt(var + EPS)                                 # (1, TC, 1)
    gamma = gamma_ref[...].astype(jnp.float32).reshape(1, tc, 1)
    beta = beta_ref[...].astype(jnp.float32).reshape(1, tc, 1)
    # Fold normalization + affine into one per-channel scale & shift so the
    # big slab only sees a single mul + add on the write path.
    scale = gamma * inv_std                                        # (1, TC, 1)
    shift = beta - mean * scale                                    # (1, TC, 1)

    # ---- Pass 3: normalize + affine, streaming re-read + store. ----------- #
    o_ref[...] = (x_ref[...].astype(jnp.float32) * scale + shift).astype(o_ref.dtype)


# --------------------------------------------------------------------------- #
# Tiling helpers (padded-VMEM-aware)
# --------------------------------------------------------------------------- #
def _round_up(a, b):
    return -(-a // b) * b


def _sublane_multiple(dtype):
    # f32 -> 8, bf16 -> 16, int8/fp8 -> 32 (sub-32-bit dtypes pack along sublanes).
    return max(8, 32 // jnp.dtype(dtype).itemsize)


def _vmem_budget_bytes():
    cap = None
    try:
        cap = getattr(pltpu.get_tpu_info(), "vmem_capacity_bytes", None)
    except Exception:
        cap = None
    if not cap:
        cap = 64 * 1024 * 1024  # conservative fallback (v7x per-TC VMEM)
    return int(cap) // 2


def _block_vmem_bytes(tile_c, n, hw, dtype):
    """Padded VMEM footprint of all double-buffered blocks for one grid step."""
    itemsize = jnp.dtype(dtype).itemsize
    sub = _sublane_multiple(dtype)
    lanes = _round_up(hw, 128)
    rows = _round_up(tile_c, sub)
    x_block = n * rows * lanes * itemsize            # one (N, TC, HW) block
    gb_block = _round_up(tile_c, 8) * 128 * 4        # one (TC, 1) f32 block (lane-padded)
    # input x + output x (each double-buffered) + gamma + beta (double-buffered)
    return 2 * (2 * x_block) + 2 * (2 * gb_block)


def _choose_tile_c(c, n, hw, dtype, vmem_budget_bytes):
    """Pick the channel tile.

    Default C/2: two "parallel" grid steps -> one per v7x TensorCore (2x
    aggregate HBM BW); on single-TC v5e/v6e two big steps still amortize the
    ~0.35us/step pipeline overhead.  Shrink by powers of two only if the
    padded, double-buffered blocks would not fit the scoped-VMEM budget.
    TODO(synk): sweep tile_c in {C, C/2} (min-of-N timing) per generation on
    v5e/v6e instead of guessing.
    """
    sub = _sublane_multiple(dtype)
    tile_c = c // 2 if (c % (2 * sub) == 0) else c
    while (_block_vmem_bytes(tile_c, n, hw, dtype) > vmem_budget_bytes
           and tile_c % (2 * sub) == 0):
        tile_c //= 2
    if _block_vmem_bytes(tile_c, n, hw, dtype) > vmem_budget_bytes:
        # TODO(synk): add an M-tiled two-pass (stats pass + normalize pass)
        # kernel for shapes where a full-(N*H*W) block cannot fit in VMEM.
        raise ValueError(
            "N*H*W too large to hold a full-M block in VMEM; an M-tiled "
            "two-pass BatchNorm kernel is required for this shape.")
    return tile_c


# --------------------------------------------------------------------------- #
# Wrapper
# --------------------------------------------------------------------------- #
def batchnorm2d(x_nchw, gamma, beta, *, tile_c=None):
    """Training-mode BatchNorm2d over NCHW input using batch statistics."""
    n, c, h, w = x_nchw.shape
    hw = h * w

    # Pure (free) reshape of the contiguous NCHW buffer -- no transpose, for
    # any batch size; the kernel reduces over the batch axis itself.
    x3d = x_nchw.reshape(n, c, hw)
    gamma2d = gamma.reshape(c, 1).astype(jnp.float32)
    beta2d = beta.reshape(c, 1).astype(jnp.float32)

    budget = _vmem_budget_bytes()
    if tile_c is None:
        tile_c = _choose_tile_c(c, n, hw, x_nchw.dtype, budget)
    sub = _sublane_multiple(x_nchw.dtype)
    assert c % tile_c == 0, "channel count must be a multiple of the channel tile"
    assert tile_c % sub == 0 or tile_c == c, (
        f"channel tile must be a multiple of the packed sublane tile ({sub}) "
        f"for dtype {x_nchw.dtype}")

    total = n * c * hw
    cost = pl.CostEstimate(
        flops=5 * total,                      # 2 reduce passes + mul/add on store
        transcendentals=c,                    # one rsqrt per channel
        bytes_accessed=2 * total * jnp.dtype(x_nchw.dtype).itemsize + 2 * c * 4,
    )

    out3d = pl.pallas_call(
        _bn_kernel,
        out_shape=jax.ShapeDtypeStruct((n, c, hw), x_nchw.dtype),
        grid_spec=pltpu.PrefetchScalarGridSpec(
            num_scalar_prefetch=0,
            grid=(c // tile_c,),
            in_specs=[
                pl.BlockSpec((n, tile_c, hw), lambda j: (0, j, 0)),
                pl.BlockSpec((tile_c, 1), lambda j: (j, 0)),
                pl.BlockSpec((tile_c, 1), lambda j: (j, 0)),
            ],
            out_specs=pl.BlockSpec((n, tile_c, hw), lambda j: (0, j, 0)),
        ),
        compiler_params=pltpu.CompilerParams(
            dimension_semantics=("parallel",),
            vmem_limit_bytes=int(budget),
        ),
        cost_estimate=cost,
    )(x3d, gamma2d, beta2d)

    return out3d.reshape(n, c, h, w)


# --------------------------------------------------------------------------- #
# Reference + test
# --------------------------------------------------------------------------- #
def _reference_bn(x_nchw, gamma, beta):
    mean = jnp.mean(x_nchw, axis=(0, 2, 3), keepdims=True)
    var = jnp.mean((x_nchw - mean) ** 2, axis=(0, 2, 3), keepdims=True)
    g = gamma.reshape(1, -1, 1, 1)
    b = beta.reshape(1, -1, 1, 1)
    return (x_nchw - mean) * lax.rsqrt(var + EPS) * g + b


if __name__ == "__main__":
    key = jax.random.PRNGKey(0)
    kx, kg, kb, kx2 = jax.random.split(key, 4)

    # Primary: same layout as the module (N=1, H=W=7), scaled-down channels.
    # (The original input is [1, 3072, 7, 7].)
    N, C, H, W = 1, 256, 7, 7
    x = jax.random.normal(kx, (N, C, H, W), dtype=jnp.float32)
    # PyTorch inits gamma=1, beta=0; perturb so the affine path is exercised.
    gamma = 1.0 + 0.1 * jax.random.normal(kg, (C,), dtype=jnp.float32)
    beta = 0.1 * jax.random.normal(kb, (C,), dtype=jnp.float32)

    out = jax.block_until_ready(batchnorm2d(x, gamma, beta))
    ref = _reference_bn(x, gamma, beta)
    assert out.shape == (N, C, H, W)
    assert jnp.allclose(out, ref, atol=1e-4, rtol=1e-4)

    # Secondary: N > 1 (batch-axis reduction inside the kernel, no wrapper
    # transpose) with a channel tile smaller than C.
    N2, C2, H2, W2 = 2, 128, 8, 8
    x2 = jax.random.normal(kx2, (N2, C2, H2, W2), dtype=jnp.float32)
    out2 = jax.block_until_ready(batchnorm2d(x2, gamma[:C2], beta[:C2]))
    ref2 = _reference_bn(x2, gamma[:C2], beta[:C2])
    assert jnp.allclose(out2, ref2, atol=1e-4, rtol=1e-4)

    print("KERNEL_OK")
</pallas_src>

<mosaic_0001>
module attributes {stable_mosaic.version = 11 : i64} {
  func.func @_bn_kernel(%arg0: i32, %arg1: memref<1x128x49xf32, #tpu.memory_space<vmem>>, %arg2: memref<128x1xf32, #tpu.memory_space<vmem>>, %arg3: memref<128x1xf32, #tpu.memory_space<vmem>>, %arg4: memref<1x128x49xf32, #tpu.memory_space<vmem>>) attributes {dimension_semantics = [#tpu.dimension_semantics<parallel>], iteration_bounds = array<i64: 2>, scalar_prefetch = 0 : i64, scratch_operands = 0 : i64, tpu.core_type = #tpu.core_type<tc>, window_params = [{transform_indices = @transform_0, window_bounds = array<i64: 1, 128, 49>}, {transform_indices = @transform_1, window_bounds = array<i64: 128, 1>}, {transform_indices = @transform_2, window_bounds = array<i64: 128, 1>}, {transform_indices = @transform_3, window_bounds = array<i64: 1, 128, 49>}]} {
    %c0 = arith.constant 0 : index
    %c0_0 = arith.constant 0 : index
    %c0_1 = arith.constant 0 : index
    %0 = vector.load %arg1[%c0, %c0_0, %c0_1] : memref<1x128x49xf32, #tpu.memory_space<vmem>>, vector<1x128x49xf32>
    %cst = arith.constant dense<0.000000e+00> : vector<1x128xf32>
    %1 = vector.multi_reduction <add>, %0, %cst [2] : vector<1x128x49xf32> to vector<1x128xf32>
    %2 = vector.shape_cast %1 : vector<1x128xf32> to vector<1x128x1xf32>
    %cst_2 = arith.constant dense<0.000000e+00> : vector<128x1xf32>
    %3 = vector.multi_reduction <add>, %2, %cst_2 [0] : vector<1x128x1xf32> to vector<128x1xf32>
    %4 = vector.shape_cast %3 : vector<128x1xf32> to vector<1x128x1xf32>
    %cst_3 = arith.constant 0.0204081628 : f32
    %5 = vector.broadcast %cst_3 : f32 to vector<1x128x1xf32>
    %6 = arith.mulf %4, %5 : vector<1x128x1xf32>
    %c0_4 = arith.constant 0 : index
    %c0_5 = arith.constant 0 : index
    %c0_6 = arith.constant 0 : index
    %7 = vector.load %arg1[%c0_4, %c0_5, %c0_6] : memref<1x128x49xf32, #tpu.memory_space<vmem>>, vector<1x128x49xf32>
    %8 = vector.broadcast %6 : vector<1x128x1xf32> to vector<1x128x49xf32>
    %9 = arith.subf %7, %8 : vector<1x128x49xf32>
    %10 = arith.mulf %9, %9 : vector<1x128x49xf32>
    %cst_7 = arith.constant dense<0.000000e+00> : vector<1x128xf32>
    %11 = vector.multi_reduction <add>, %10, %cst_7 [2] : vector<1x128x49xf32> to vector<1x128xf32>
    %12 = vector.shape_cast %11 : vector<1x128xf32> to vector<1x128x1xf32>
    %cst_8 = arith.constant dense<0.000000e+00> : vector<128x1xf32>
    %13 = vector.multi_reduction <add>, %12, %cst_8 [0] : vector<1x128x1xf32> to vector<128x1xf32>
    %14 = vector.shape_cast %13 : vector<128x1xf32> to vector<1x128x1xf32>
    %cst_9 = arith.constant 0.0204081628 : f32
    %15 = vector.broadcast %cst_9 : f32 to vector<1x128x1xf32>
    %16 = arith.mulf %14, %15 : vector<1x128x1xf32>
    %cst_10 = arith.constant 9.99999974E-6 : f32
    %17 = vector.broadcast %cst_10 : f32 to vector<1x128x1xf32>
    %18 = arith.addf %16, %17 : vector<1x128x1xf32>
    %19 = math.rsqrt %18 : vector<1x128x1xf32>
    %c0_11 = arith.constant 0 : index
    %c0_12 = arith.constant 0 : index
    %20 = vector.load %arg2[%c0_11, %c0_12] : memref<128x1xf32, #tpu.memory_space<vmem>>, vector<128x1xf32>
    %21 = vector.shape_cast %20 : vector<128x1xf32> to vector<1x128x1xf32>
    %c0_13 = arith.constant 0 : index
    %c0_14 = arith.constant 0 : index
    %22 = vector.load %arg3[%c0_13, %c0_14] : memref<128x1xf32, #tpu.memory_space<vmem>>, vector<128x1xf32>
    %23 = vector.shape_cast %22 : vector<128x1xf32> to vector<1x128x1xf32>
    %24 = arith.mulf %21, %19 : vector<1x128x1xf32>
    %25 = arith.mulf %6, %24 : vector<1x128x1xf32>
    %26 = arith.subf %23, %25 : vector<1x128x1xf32>
    %c0_15 = arith.constant 0 : index
    %c0_16 = arith.constant 0 : index
    %c0_17 = arith.constant 0 : index
    %27 = vector.load %arg1[%c0_15, %c0_16, %c0_17] : memref<1x128x49xf32, #tpu.memory_space<vmem>>, vector<1x128x49xf32>
    %28 = vector.broadcast %24 : vector<1x128x1xf32> to vector<1x128x49xf32>
    %29 = arith.mulf %27, %28 : vector<1x128x49xf32>
    %30 = vector.broadcast %26 : vector<1x128x1xf32> to vector<1x128x49xf32>
    %31 = arith.addf %29, %30 : vector<1x128x49xf32>
    %c0_18 = arith.constant 0 : index
    %c0_19 = arith.constant 0 : index
    %c0_20 = arith.constant 0 : index
    %32 = vector.load %arg4[%c0_18, %c0_19, %c0_20] : memref<1x128x49xf32, #tpu.memory_space<vmem>>, vector<1x128x49xf32>
    tpu.vector_store %arg4[%c0_18, %c0_19, %c0_20], %31 {strides = array<i32>} : memref<1x128x49xf32, #tpu.memory_space<vmem>>, vector<1x128x49xf32>,
    return
  }
  func.func @transform_0(%arg0: i32) -> (i32, i32, i32) {
    %c0_i32 = arith.constant 0 : i32
    %c0_i32_0 = arith.constant 0 : i32
    %c0_i32_1 = arith.constant 0 : i32
    return %c0_i32, %arg0, %c0_i32_0 : i32, i32, i32
  }
  func.func @transform_1(%arg0: i32) -> (i32, i32) {
    %c0_i32 = arith.constant 0 : i32
    %c0_i32_0 = arith.constant 0 : i32
    return %arg0, %c0_i32 : i32, i32
  }
  func.func @transform_2(%arg0: i32) -> (i32, i32) {
    %c0_i32 = arith.constant 0 : i32
    %c0_i32_0 = arith.constant 0 : i32
    return %arg0, %c0_i32 : i32, i32
  }
  func.func @transform_3(%arg0: i32) -> (i32, i32, i32) {
    %c0_i32 = arith.constant 0 : i32
    %c0_i32_0 = arith.constant 0 : i32
    %c0_i32_1 = arith.constant 0 : i32
    return %c0_i32, %arg0, %c0_i32_0 : i32, i32, i32
  }
}

</mosaic_0001>

<bundles_post_ra>
// kernel: tpu_custom_call.1
= control target key start
LH: loop header
LB: loop body
LE: loop exit
PB: predicated region body
PF: predicated region fallthrough
CT: control target
= control target key end

     0   :  { %s914_s12 = smov 0   ;;  %s1235_s0 = inlined_call_operand.vmem [shape: f32[1,256,49], index: 0, kind: input, shape index: {}]   ;;  %s1236_s1 = inlined_call_operand.vmem [shape: f32[256,1], index: 1, kind: input, shape index: {}]   ;;  %s1237_s2 = inlined_call_operand.vmem [shape: f32[256,1], index: 2, kind: input, shape index: {}]   ;;  %s1238_s3 = inlined_call_operand.vmem [shape: f32[1,256,49], index: 3, kind: output, shape index: {}]  }
   0x1 LB: > { %s827_s13 = sadd.s32 4294967295, %s891_s12   ;;  %p831_p0 = scmp.ge.s32.totalorder %s891_s12, 1  ;;  %s891_s12 = sphi %s914_s12, %s13_s12  }
   0x2   : > { %p160_p1 = scmp.lt.s32.totalorder %s891_s12, 3 }
   0x4   : > { %p161_p2 = pnand %p831_p0, %p160_p1 }
   0x5   : > { %s832_s14 = sshll.u32 (!%p161_p2), %s827_s13, 4  ;;  %vm234_vm0 = vcmask (!%p161_p2), 400384  }
   0x6   : > { %164 = sbr.rel (%p161_p2) target bundleno = 533 (0x215), region = 32  ;;  %p195_p3 = scmp.lt.s32.totalorder (!%p161_p2), %s832_s14, 31 }
   0xd   : > { %s1240_s14 = smov (!%p195_p3, %s832_s14), 31 }
   0xe   : > { %s922_s15 = sshll.u32 %s1240_s14, 3 }
   0xf   : > { %s928_s18 = scalar_lea.vmem %s1235_s0, %s922_s15  ;;  %s1094_s21 = scalar_lea.vmem %s1236_s1, %s922_s15 }
  0x10   : > { %v931_v0 = vld [vmem:[%s928_s18] sm:$0xff]  ;;  %v934_v1 = vld [vmem:[%s928_s18 + $0x10] sm:$0xff]  ;;  %v937_v2 = vld [vmem:[%s928_s18 + $0x8] sm:$0xff]  ;;  %s1134_s24 = scalar_lea.vmem %s1237_s2, %s922_s15  ;;  %s1183_s27 = scalar_lea.vmem %s1238_s3, %s922_s15 }
  0x11   : > { %v235_v3 = vsel %vm234_vm0, %v931_v0, 0.0  ;;  %v241_v4 = vsel %vm234_vm0, %v934_v1, 0.0  ;;  %v944_v5 = vld [vmem:[%s928_s18 + $0x18] sm:$0xff]  ;;  %v238_v6 = vsel %vm234_vm0, %v937_v2, 0.0  ;;  %v951_v8 = vld [vmem:[%s928_s18 + $0x20] sm:$0xff]  ;;  %v954_v9 = vld [vmem:[%s928_s18 + $0x28] sm:$0xff] }
  0x12   : > { %236 = vadd.xlane.f32.xlu0 %v235_v3  ;;  %242 = vadd.xlane.f32.xlu1 %v241_v4  ;;  %v244_v7 = vsel %vm234_vm0, %v944_v5, 0.0  ;;  %v247_v10 = vsel %vm234_vm0, %v951_v8, 0.0  ;;  %v250_v11 = vsel %vm234_vm0, %v954_v9, 0.0  ;;  %v961_v12 = vld [vmem:[%s928_s18 + $0x30] sm:$0xff]  ;;  %v964_v13 = vld [vmem:[%s928_s18 + $0x38] sm:$0xff]  ;;  %v971_v16 = vld [vmem:[%s928_s18 + $0x40] sm:$0xff] }
  0x13   : > { %v253_v14 = vsel %vm234_vm0, %v961_v12, 0.0  ;;  %v256_v15 = vsel %vm234_vm0, %v964_v13, 0.0  ;;  %v974_v17 = vld [vmem:[%s928_s18 + $0x48] sm:$0xff]  ;;  %v259_v18 = vsel %vm234_vm0, %v971_v16, 0.0  ;;  %v981_v20 = vld [vmem:[%s928_s18 + $0x50] sm:$0xff]  ;;  %v984_v21 = vld [vmem:[%s928_s18 + $0x58] sm:$0xff] }
  0x14   : > { %v262_v19 = vsel %vm234_vm0, %v974_v17, 0.0  ;;  %v265_v22 = vsel %vm234_vm0, %v981_v20, 0.0  ;;  %v268_v23 = vsel %vm234_vm0, %v984_v21, 0.0  ;;  %v991_v24 = vld [vmem:[%s928_s18 + $0x60] sm:$0xff]  ;;  %v994_v25 = vld [vmem:[%s928_s18 + $0x68] sm:$0xff]  ;;  %v1001_v28 = vld [vmem:[%s928_s18 + $0x70] sm:$0xff] }
  0x15   : > { %v271_v26 = vsel %vm234_vm0, %v991_v24, 0.0  ;;  %v274_v27 = vsel %vm234_vm0, %v994_v25, 0.0  ;;  %v1004_v29 = vld [vmem:[%s928_s18 + $0x78] sm:$0xff]  ;;  %v277_v30 = vsel %vm234_vm0, %v1001_v28, 0.0 }
  0x16   : > { %239 = vadd.xlane.f32.xlu0 %v238_v6  ;;  %245 = vadd.xlane.f32.xlu1 %v244_v7  ;;  %v280_v31 = vsel %vm234_vm0, %v1004_v29, 0.0 }
  0x1a   : > { %248 = vadd.xlane.f32.xlu0 %v247_v10  ;;  %251 = vadd.xlane.f32.xlu1 %v250_v11 }
  0x1e   : > { %254 = vadd.xlane.f32.xlu0 %v253_v14  ;;  %257 = vadd.xlane.f32.xlu1 %v256_v15 }
  0x22   : > { %260 = vadd.xlane.f32.xlu0 %v259_v18  ;;  %263 = vadd.xlane.f32.xlu1 %v262_v19 }
  0x26   : > { %266 = vadd.xlane.f32.xlu0 %v265_v22  ;;  %269 = vadd.xlane.f32.xlu1 %v268_v23 }
  0x2a   : > { %272 = vadd.xlane.f32.xlu0 %v271_v26  ;;  %275 = vadd.xlane.f32.xlu1 %v274_v27 }
  0x2e   : > { %278 = vadd.xlane.f32.xlu0 %v277_v30  ;;  %281 = vadd.xlane.f32.xlu1 %v280_v31 }
  0x9f   : > { %v237_v32 = vpop.xlane.xlu0 %236  ;;  %v243_v33 = vpop.xlane.xlu1 %242 }
  0xa0   : > { %v1010_v34 = vmul.f32 0.020408163, %v237_v32  ;;  %v1012_v35 = vmul.f32 0.020408163, %v243_v33 }
  0xa2   : > { %v315_v36 = vsub.f32 %v931_v0, %v1010_v34  ;;  %v317_v37 = vsub.f32 %v934_v1, %v1012_v35 }
  0xa3   : > { %v240_v38 = vpop.xlane.xlu0 %239  ;;  %v246_v39 = vpop.xlane.xlu1 %245 }
  0xa4   : > { %v1018_v40 = vmul.f32 0.020408163, %v240_v38  ;;  %v1020_v41 = vmul.f32 0.020408163, %v246_v39  ;;  %v331_v42 = vmul.f32 %v315_v36, %v315_v36  ;;  %v333_v43 = vmul.f32 %v317_v37, %v317_v37 }
  0xa6   : > { %v316_v44 = vsub.f32 %v937_v2, %v1018_v40  ;;  %v318_v45 = vsub.f32 %v944_v5, %v1020_v41  ;;  %v347_v46 = vsel %vm234_vm0, %v331_v42, 0.0  ;;  %v353_v49 = vsel %vm234_vm0, %v333_v43, 0.0 }
  0xa7   : > { %348 = vadd.xlane.f32.xlu0 %v347_v46  ;;  %v249_v47 = vpop.xlane.xlu0 %248  ;;  %v252_v48 = vpop.xlane.xlu1 %251 }
  0xa8   : > { %v1028_v50 = vmul.f32 0.020408163, %v249_v47  ;;  %v1030_v51 = vmul.f32 0.020408163, %v252_v48  ;;  %v332_v52 = vmul.f32 %v316_v44, %v316_v44  ;;  %v334_v53 = vmul.f32 %v318_v45, %v318_v45 }
  0xaa   : > { %v319_v54 = vsub.f32 %v951_v8, %v1028_v50  ;;  %v320_v55 = vsub.f32 %v954_v9, %v1030_v51  ;;  %v350_v56 = vsel %vm234_vm0, %v332_v52, 0.0  ;;  %v356_v59 = vsel %vm234_vm0, %v334_v53, 0.0 }
  0xab   : > { %354 = vadd.xlane.f32.xlu0 %v353_v49  ;;  %351 = vadd.xlane.f32.xlu1 %v350_v56  ;;  %v255_v57 = vpop.xlane.xlu0 %254  ;;  %v258_v58 = vpop.xlane.xlu1 %257 }
  0xac   : > { %v1038_v60 = vmul.f32 0.020408163, %v255_v57  ;;  %v1040_v61 = vmul.f32 0.020408163, %v258_v58  ;;  %v335_v62 = vmul.f32 %v319_v54, %v319_v54  ;;  %v336_v63 = vmul.f32 %v320_v55, %v320_v55 }
  0xae   : > { %v321_v3 = vsub.f32 %v961_v12, %v1038_v60  ;;  %v322_v4 = vsub.f32 %v964_v13, %v1040_v61  ;;  %v359_v6 = vsel %vm234_vm0, %v335_v62, 0.0  ;;  %v362_v11 = vsel %vm234_vm0, %v336_v63, 0.0 }
  0xaf   : > { %357 = vadd.xlane.f32.xlu1 %v356_v59  ;;  %360 = vadd.xlane.f32.xlu0 %v359_v6  ;;  %v261_v7 = vpop.xlane.xlu0 %260  ;;  %v264_v10 = vpop.xlane.xlu1 %263 }
  0xb0   : > { %v1048_v14 = vmul.f32 0.020408163, %v261_v7  ;;  %v1050_v15 = vmul.f32 0.020408163, %v264_v10  ;;  %v337_v18 = vmul.f32 %v321_v3, %v321_v3  ;;  %v338_v19 = vmul.f32 %v322_v4, %v322_v4 }
  0xb2   : > { %v323_v22 = vsub.f32 %v971_v16, %v1048_v14  ;;  %v324_v23 = vsub.f32 %v974_v17, %v1050_v15  ;;  %v365_v26 = vsel %vm234_vm0, %v337_v18, 0.0  ;;  %v368_v31 = vsel %vm234_vm0, %v338_v19, 0.0 }
  0xb3   : > { %363 = vadd.xlane.f32.xlu1 %v362_v11  ;;  %366 = vadd.xlane.f32.xlu0 %v365_v26  ;;  %v267_v27 = vpop.xlane.xlu0 %266  ;;  %v270_v30 = vpop.xlane.xlu1 %269 }
  0xb4   : > { %v1058_v32 = vmul.f32 0.020408163, %v267_v27  ;;  %v1060_v33 = vmul.f32 0.020408163, %v270_v30  ;;  %v339_v36 = vmul.f32 %v323_v22, %v323_v22  ;;  %v340_v37 = vmul.f32 %v324_v23, %v324_v23 }
  0xb5   : > { %v893_v22 = vmov 0  }
  0xb6   : > { %v325_v38 = vsub.f32 %v981_v20, %v1058_v32  ;;  %v326_v39 = vsub.f32 %v984_v21, %v1060_v33  ;;  %v371_v42 = vsel %vm234_vm0, %v339_v36, 0.0  ;;  %v374_v45 = vsel %vm234_vm0, %v340_v37, 0.0  ;;  %851 = vset.pattern.permute.xlu0 %v893_v22  ;;  %852 = vset.pattern.permute.xlu1 %v893_v22  ;;  %v461_v22 = vld [vmem:[%s1094_s21 + $0x10] sm:$0xff] }
  0xb7   : > { %369 = vadd.xlane.f32.xlu1 %v368_v31  ;;  %372 = vadd.xlane.f32.xlu0 %v371_v42  ;;  %v273_v43 = vpop.xlane.xlu0 %272  ;;  %v276_v44 = vpop.xlane.xlu1 %275 }
  0xb8   : > { %v1068_v46 = vmul.f32 0.020408163, %v273_v43  ;;  %v1070_v47 = vmul.f32 0.020408163, %v276_v44  ;;  %v341_v48 = vmul.f32 %v325_v38, %v325_v38  ;;  %v342_v49 = vmul.f32 %v326_v39, %v326_v39 }
  0xba   : > { %v327_v52 = vsub.f32 %v991_v24, %v1068_v46  ;;  %v328_v53 = vsub.f32 %v994_v25, %v1070_v47  ;;  %v377_v54 = vsel %vm234_vm0, %v341_v48, 0.0  ;;  %v380_v57 = vsel %vm234_vm0, %v342_v49, 0.0 }
  0xbb   : > { %375 = vadd.xlane.f32.xlu1 %v374_v45  ;;  %378 = vadd.xlane.f32.xlu0 %v377_v54  ;;  %v279_v55 = vpop.xlane.xlu0 %278  ;;  %v282_v56 = vpop.xlane.xlu1 %281 }
  0xbc   : > { %v1078_v58 = vmul.f32 0.020408163, %v279_v55  ;;  %v1080_v59 = vmul.f32 0.020408163, %v282_v56  ;;  %v343_v62 = vmul.f32 %v327_v52, %v327_v52  ;;  %v344_v63 = vmul.f32 %v328_v53, %v328_v53  ;;  %v459_v53 = vld [vmem:[%s1094_s21] sm:$0xff] }
  0xbe   : > { %v329_v3 = vsub.f32 %v1001_v28, %v1078_v58  ;;  %v330_v4 = vsub.f32 %v1004_v29, %v1080_v59  ;;  %v383_v6 = vsel %vm234_vm0, %v343_v62, 0.0  ;;  %v386_v7 = vsel %vm234_vm0, %v344_v63, 0.0  ;;  %v460_v63 = vld [vmem:[%s1094_s21 + $0x8] sm:$0xff] }
  0xbf   : > { %381 = vadd.xlane.f32.xlu1 %v380_v57  ;;  %384 = vadd.xlane.f32.xlu0 %v383_v6 }
  0xc0   : > { %v345_v10 = vmul.f32 %v329_v3, %v329_v3  ;;  %v346_v11 = vmul.f32 %v330_v4, %v330_v4 }
  0xc2   : > { %v389_v18 = vsel %vm234_vm0, %v345_v10, 0.0  ;;  %v392_v19 = vsel %vm234_vm0, %v346_v11, 0.0 }
  0xc3   : > { %387 = vadd.xlane.f32.xlu1 %v386_v7  ;;  %390 = vadd.xlane.f32.xlu0 %v389_v18 }
  0xc7   : > { %393 = vadd.xlane.f32.xlu1 %v392_v19 }
 0x134   : > { %v349_v23 = vpop.xlane.xlu0 %348 }
 0x135   : > { %v411_v26 = vmul.f32 0.020408163, %v349_v23 }
 0x137   : > { %v427_v27 = vadd.f32 1e-05, %v411_v26 }
 0x138   : > { %v352_v30 = vpop.xlane.xlu1 %351  ;;  %v355_v31 = vpop.xlane.xlu0 %354 }
 0x139   : > { %853 = vrsqrt.f32 %v427_v27  ;;  %v412_v36 = vmul.f32 0.020408163, %v352_v30  ;;  %v413_v37 = vmul.f32 0.020408163, %v355_v31 }
 0x13b   : > { %v428_v38 = vadd.f32 1e-05, %v412_v36  ;;  %v429_v39 = vadd.f32 1e-05, %v413_v37 }
 0x13c   : > { %v358_v42 = vpop.xlane.xlu1 %357  ;;  %v361_v43 = vpop.xlane.xlu0 %360 }
 0x13d   : > { %855 = vrsqrt.f32 %v428_v38  ;;  %v414_v44 = vmul.f32 0.020408163, %v358_v42  ;;  %v415_v48 = vmul.f32 0.020408163, %v361_v43 }
 0x13e   : > { %857 = vrsqrt.f32 %v429_v39  ;;  %v462_v39 = vld [vmem:[%s1094_s21 + $0x18] sm:$0xff] }
 0x13f   : > { %v430_v45 = vadd.f32 1e-05, %v414_v44  ;;  %v431_v55 = vadd.f32 1e-05, %v415_v48 }
 0x140   : > { %v364_v49 = vpop.xlane.xlu1 %363  ;;  %v367_v52 = vpop.xlane.xlu0 %366 }
 0x141   : > { %859 = vrsqrt.f32 %v430_v45  ;;  %v416_v56 = vmul.f32 0.020408163, %v364_v49  ;;  %v417_v7 = vmul.f32 0.020408163, %v367_v52 }
 0x142   : > { %861 = vrsqrt.f32 %v431_v55 }
 0x143   : > { %v854_v54 = vpop.eup %853  ;;  %v432_v6 = vadd.f32 1e-05, %v416_v56  ;;  %v433_v23 = vadd.f32 1e-05, %v417_v7  ;;  %v468_v7 = vld [vmem:[%s1094_s21 + $0x48] sm:$0xff] }
 0x144   : > { %v370_v57 = vpop.xlane.xlu1 %369  ;;  %v1097_v62 = vmul.f32 %v854_v54, %v459_v53  ;;  %v373_v3 = vpop.xlane.xlu0 %372  ;;  %v463_v53 = vld [vmem:[%s1094_s21 + $0x20] sm:$0xff] }
 0x145   : > { %863 = vrsqrt.f32 %v432_v6  ;;  %v418_v26 = vmul.f32 0.020408163, %v370_v57  ;;  %v419_v43 = vmul.f32 0.020408163, %v373_v3 }
 0x146   : > { %541 = vperm.xlu0 %851, %v1097_v62  }
 0x147   : > { %v856_v4 = vpop.eup %855  ;;  %v434_v42 = vadd.f32 1e-05, %v418_v26  ;;  %v435_v55 = vadd.f32 1e-05, %v419_v43 }
 0x148   : > { %v376_v10 = vpop.xlane.xlu1 %375  ;;  %v1101_v11 = vmul.f32 %v856_v4, %v460_v63  ;;  %v858_v18 = vpop.eup %857 }
 0x149   : > { %v420_v19 = vmul.f32 0.020408163, %v376_v10  ;;  %v379_v30 = vpop.xlane.xlu0 %378  ;;  %v1105_v36 = vmul.f32 %v858_v18, %v461_v22  ;;  %v464_v10 = vld [vmem:[%s1094_s21 + $0x28] sm:$0xff] }
 0x14a   : > { %546 = vperm.xlu1 %852, %v1101_v11   ;;  %v421_v56 = vmul.f32 0.020408163, %v379_v30 }
 0x14b   : > { %v436_v27 = vadd.f32 1e-05, %v420_v19  ;;  %v860_v37 = vpop.eup %859 }
 0x14c   : > { %v382_v31 = vpop.xlane.xlu1 %381  ;;  %v1109_v48 = vmul.f32 %v860_v37, %v462_v39  ;;  %v862_v49 = vpop.eup %861  ;;  %v437_v19 = vadd.f32 1e-05, %v421_v56  ;;  %v470_v37 = vld [vmem:[%s1094_s21 + $0x58] sm:$0xff] }
 0x14d   : > { %865 = vrsqrt.f32 %v436_v27  ;;  %v422_v38 = vmul.f32 0.020408163, %v382_v31  ;;  %v385_v54 = vpop.xlane.xlu0 %384  ;;  %v1113_v4 = vmul.f32 %v862_v49, %v463_v53  ;;  %v466_v53 = vld [vmem:[%s1094_s21 + $0x38] sm:$0xff] }
 0x14e   : > { %551 = vperm.xlu1 %852, %v1105_v36   ;;  %867 = vrsqrt.f32 %v433_v23  ;;  %v423_v22 = vmul.f32 0.020408163, %v385_v54 }
 0x14f   : > { %v438_v44 = vadd.f32 1e-05, %v422_v38  ;;  %v864_v3 = vpop.eup %863  ;;  %v465_v38 = vld [vmem:[%s1094_s21 + $0x30] sm:$0xff] }
 0x150   : > { %v388_v45 = vpop.xlane.xlu1 %387  ;;  %v496_v30 = vmul.f32 %v864_v3, %v464_v10  ;;  %v474_v3 = vld [vmem:[%s1094_s21 + $0x78] sm:$0xff] }
 0x151   : > { %869 = vrsqrt.f32 %v438_v44  ;;  %v424_v52 = vmul.f32 0.020408163, %v388_v45  ;;  %v391_v26 = vpop.xlane.xlu0 %390 }
 0x152   : > { %556 = vperm.xlu1 %852, %v1109_v48   ;;  %871 = vrsqrt.f32 %v434_v42  ;;  %v439_v42 = vadd.f32 1e-05, %v423_v22  ;;  %v425_v43 = vmul.f32 0.020408163, %v391_v26  ;;  %v469_v26 = vld [vmem:[%s1094_s21 + $0x50] sm:$0xff] }
 0x153   : > { %v440_v57 = vadd.f32 1e-05, %v424_v52  ;;  %v472_v52 = vld [vmem:[%s1094_s21 + $0x68] sm:$0xff] }
 0x154   : > { %v394_v63 = vpop.xlane.xlu1 %393 }
 0x155   : > { %873 = vrsqrt.f32 %v440_v57  ;;  %v426_v6 = vmul.f32 0.020408163, %v394_v63 }
 0x156   : > { %561 = vperm.xlu1 %852, %v1113_v4   ;;  %875 = vrsqrt.f32 %v435_v55  ;;  %v441_v55 = vadd.f32 1e-05, %v425_v43  ;;  %v471_v43 = vld [vmem:[%s1094_s21 + $0x60] sm:$0xff] }
 0x157   : > { %v866_v18 = vpop.eup %865  ;;  %v442_v23 = vadd.f32 1e-05, %v426_v6  ;;  %v467_v6 = vld [vmem:[%s1094_s21 + $0x40] sm:$0xff] }
 0x158   : > { %v1118_v27 = vmul.f32 %v866_v18, %v468_v7  ;;  %v868_v31 = vpop.eup %867 }
 0x159   : > { %877 = vrsqrt.f32 %v442_v23  ;;  %v1123_v45 = vmul.f32 %v868_v31, %v465_v38  ;;  %v476_v23 = vld [vmem:[%s1134_s24 + $0x8] sm:$0xff]  ;;  %v510_v38 = vmul.f32 %v1109_v48, %v1020_v41 }
 0x15a   : > { %586 = vperm.xlu0 %851, %v1118_v27   ;;  %566 = vperm.xlu1 %852, %v496_v30   ;;  %879 = vrsqrt.f32 %v437_v19  ;;  %v508_v19 = vmul.f32 %v1101_v11, %v1018_v40 }
 0x15b   : > { %v870_v39 = vpop.eup %869  ;;  %881 = vrsqrt.f32 %v439_v42  ;;  %v478_v42 = vld [vmem:[%s1134_s24 + $0x18] sm:$0xff] }
 0x15c   : > { %v502_v44 = vmul.f32 %v870_v39, %v470_v37  ;;  %v872_v49 = vpop.eup %871  ;;  %883 = vrsqrt.f32 %v441_v55  ;;  %v524_v31 = vsub.f32 %v476_v23, %v508_v19  ;;  %v526_v40 = vsub.f32 %v478_v42, %v510_v38  ;;  %v488_v38 = vld [vmem:[%s1134_s24 + $0x68] sm:$0xff]  ;;  %v490_v42 = vld [vmem:[%s1134_s24 + $0x78] sm:$0xff] }
 0x15d   : > { %v498_v57 = vmul.f32 %v872_v49, %v466_v53  ;;  %v512_v49 = vmul.f32 %v496_v30, %v1030_v51  ;;  %v480_v53 = vld [vmem:[%s1134_s24 + $0x28] sm:$0xff]  ;;  %v509_v19 = vmul.f32 %v1105_v36, %v1012_v35  ;;  %v511_v23 = vmul.f32 %v1113_v4, %v1028_v50 }
 0x15e   : > { %596 = vperm.xlu0 %851, %v502_v44   ;;  %571 = vperm.xlu1 %852, %v1123_v45  }
 0x15f   : > { %v874_v54 = vpop.eup %873  ;;  %v528_v55 = vsub.f32 %v480_v53, %v512_v49  ;;  %v514_v48 = vmul.f32 %v498_v57, %v1040_v61  ;;  %v477_v61 = vld [vmem:[%s1134_s24 + $0x10] sm:$0xff] }
 0x160   : > { %v504_v56 = vmul.f32 %v874_v54, %v472_v52  ;;  %v876_v63 = vpop.eup %875  ;;  %v473_v54 = vld [vmem:[%s1094_s21 + $0x70] sm:$0xff] }
 0x161   : > { %v499_v18 = vmul.f32 %v876_v63, %v467_v6  ;;  %v507_v63 = vmul.f32 %v1097_v62, %v1010_v34  ;;  %v475_v6 = vld [vmem:[%s1134_s24] sm:$0xff]  ;;  %v525_v62 = vsub.f32 %v477_v61, %v509_v19 }
 0x162   : > { %606 = vperm.xlu0 %851, %v504_v56   ;;  %576 = vperm.xlu1 %852, %v498_v57   ;;  %v518_v57 = vmul.f32 %v502_v44, %v1060_v33  ;;  %v520_v36 = vmul.f32 %v504_v56, %v1070_v47 }
 0x163   : > { %v878_v7 = vpop.eup %877  ;;  %v523_v30 = vsub.f32 %v475_v6, %v507_v63  ;;  %v515_v44 = vmul.f32 %v499_v18, %v1048_v14 }
 0x164   : > { %v506_v10 = vmul.f32 %v878_v7, %v474_v3  ;;  %v880_v22 = vpop.eup %879  ;;  %v482_v3 = vld [vmem:[%s1134_s24 + $0x38] sm:$0xff]  ;;  %v516_v7 = vmul.f32 %v1118_v27, %v1050_v15  ;;  %v513_v27 = vmul.f32 %v1123_v45, %v1038_v60  ;;  %v536_v33 = vsub.f32 %v488_v38, %v520_v36  ;;  %v485_v45 = vld [vmem:[%s1134_s24 + $0x50] sm:$0xff] }
 0x165   : > { %v501_v37 = vmul.f32 %v880_v22, %v469_v26  ;;  %v882_v39 = vpop.eup %881  ;;  %v530_v51 = vsub.f32 %v482_v3, %v514_v48  ;;  %v484_v22 = vld [vmem:[%s1134_s24 + $0x48] sm:$0xff]  ;;  %v486_v26 = vld [vmem:[%s1134_s24 + $0x58] sm:$0xff] }
 0x166   : > { %616 = vperm.xlu0 %851, %v506_v10   ;;  %581 = vperm.xlu1 %852, %v499_v18   ;;  %v503_v11 = vmul.f32 %v882_v39, %v471_v43  ;;  %v884_v52 = vpop.eup %883  ;;  %v532_v34 = vsub.f32 %v484_v22, %v516_v7  ;;  %v534_v35 = vsub.f32 %v486_v26, %v518_v57  ;;  %v481_v39 = vld [vmem:[%s1134_s24 + $0x30] sm:$0xff]  ;;  %v483_v43 = vld [vmem:[%s1134_s24 + $0x40] sm:$0xff] }
 0x167   : > { %v505_v41 = vmul.f32 %v884_v52, %v473_v54  ;;  %v529_v50 = vsub.f32 %v481_v39, %v513_v27  ;;  %v522_v4 = vmul.f32 %v506_v10, %v1080_v59  ;;  %v531_v56 = vsub.f32 %v483_v43, %v515_v44  ;;  %v487_v52 = vld [vmem:[%s1134_s24 + $0x60] sm:$0xff]  ;;  %v489_v10 = vld [vmem:[%s1134_s24 + $0x70] sm:$0xff] }
 0x168   : > { %v517_v60 = vmul.f32 %v501_v37, %v1058_v32  ;;  %v519_v49 = vmul.f32 %v503_v11, %v1068_v46 }
 0x169   : > { %v538_v47 = vsub.f32 %v490_v42, %v522_v4  ;;  %v521_v14 = vmul.f32 %v505_v41, %v1078_v58 }
 0x16a   : > { %642 = vperm.xlu0 %851, %v524_v31   ;;  %591 = vperm.xlu1 %852, %v501_v37   ;;  %v479_v31 = vld [vmem:[%s1134_s24 + $0x20] sm:$0xff]  ;;  %v535_v59 = vsub.f32 %v487_v52, %v519_v49 }
 0x16b   : > { %v527_v15 = vsub.f32 %v479_v31, %v511_v23  ;;  %v537_v18 = vsub.f32 %v489_v10, %v521_v14 }
 0x16e   : > { %652 = vperm.xlu0 %851, %v526_v40   ;;  %601 = vperm.xlu1 %852, %v503_v11   ;;  %v533_v40 = vsub.f32 %v485_v45, %v517_v60 }
 0x172   : > { %662 = vperm.xlu0 %851, %v528_v55   ;;  %611 = vperm.xlu1 %852, %v505_v41  }
 0x176   : > { %672 = vperm.xlu0 %851, %v530_v51   ;;  %637 = vperm.xlu1 %852, %v523_v30  }
 0x17a   : > { %682 = vperm.xlu0 %851, %v532_v34   ;;  %647 = vperm.xlu1 %852, %v525_v62  }
 0x17e   : > { %692 = vperm.xlu0 %851, %v534_v35   ;;  %657 = vperm.xlu1 %852, %v527_v15  }
 0x182   : > { %702 = vperm.xlu0 %851, %v536_v33   ;;  %667 = vperm.xlu1 %852, %v529_v50  }
 0x186   : > { %712 = vperm.xlu0 %851, %v538_v47   ;;  %677 = vperm.xlu1 %852, %v531_v56  }
 0x18a   : > { %687 = vperm.xlu1 %852, %v533_v40  }
 0x18e   : > { %697 = vperm.xlu1 %852, %v535_v59  }
 0x192   : > { %707 = vperm.xlu1 %852, %v537_v18  }
 0x1c5   : > { %v542_v32 = vpop.permute.xlu0 %541 }
 0x1c6   : > { %v619_v31 = vmul.f32 %v542_v32, %v931_v0 }
 0x1c9   : > { %v547_v53 = vpop.permute.xlu1 %546 }
 0x1ca   : > { %v620_v58 = vmul.f32 %v547_v53, %v937_v2 }
 0x1cd   : > { %v552_v54 = vpop.permute.xlu1 %551 }
 0x1ce   : > { %v621_v38 = vmul.f32 %v552_v54, %v934_v1 }
 0x1d1   : > { %v557_v55 = vpop.permute.xlu1 %556 }
 0x1d2   : > { %v622_v22 = vmul.f32 %v557_v55, %v944_v5 }
 0x1d5   : > { %v562_v37 = vpop.permute.xlu1 %561 }
 0x1d6   : > { %v623_v50 = vmul.f32 %v562_v37, %v951_v8 }
 0x1d9   : > { %v567_v48 = vpop.permute.xlu1 %566  ;;  %v587_v63 = vpop.permute.xlu0 %586 }
 0x1da   : > { %v624_v2 = vmul.f32 %v567_v48, %v954_v9  ;;  %v628_v9 = vmul.f32 %v587_v63, %v974_v17 }
 0x1dd   : > { %v572_v3 = vpop.permute.xlu1 %571  ;;  %v597_v6 = vpop.permute.xlu0 %596 }
 0x1de   : > { %v630_v4 = vmul.f32 %v597_v6, %v984_v21  ;;  %v625_v43 = vmul.f32 %v572_v3, %v961_v12 }
 0x1e1   : > { %v577_v46 = vpop.permute.xlu1 %576  ;;  %v607_v11 = vpop.permute.xlu0 %606 }
 0x1e2   : > { %v626_v35 = vmul.f32 %v577_v46, %v964_v13  ;;  %v632_v47 = vmul.f32 %v607_v11, %v994_v25 }
 0x1e5   : > { %v582_v51 = vpop.permute.xlu1 %581  ;;  %v617_v30 = vpop.permute.xlu0 %616 }
 0x1e6   : > { %v627_v45 = vmul.f32 %v582_v51, %v971_v16  ;;  %v634_v40 = vmul.f32 %v617_v30, %v1004_v29 }
 0x1e9   : > { %v592_v41 = vpop.permute.xlu1 %591  ;;  %v643_v7 = vpop.permute.xlu0 %642 }
 0x1ea   : > { %v716_v19 = vadd.f32 %v643_v7, %v620_v58  ;;  %v629_v59 = vmul.f32 %v592_v41, %v981_v20 }
 0x1ec   : > { %732 = vst.msk [vmem:[%s1183_s27 + $0x8] sm:$0xff] %vm234_vm0, %v716_v19 }
 0x1ed   : > { %v602_v61 = vpop.permute.xlu1 %601  ;;  %v653_v34 = vpop.permute.xlu0 %652 }
 0x1ee   : > { %v718_v62 = vadd.f32 %v653_v34, %v622_v22  ;;  %v631_v29 = vmul.f32 %v602_v61, %v991_v24 }
 0x1f0   : > { %734 = vst.msk [vmem:[%s1183_s27 + $0x18] sm:$0xff] %vm234_vm0, %v718_v62 }
 0x1f1   : > { %v612_v57 = vpop.permute.xlu1 %611  ;;  %v663_v23 = vpop.permute.xlu0 %662 }
 0x1f2   : > { %v720_v26 = vadd.f32 %v663_v23, %v624_v2  ;;  %v633_v53 = vmul.f32 %v612_v57, %v1001_v28 }
 0x1f4   : > { %736 = vst.msk [vmem:[%s1183_s27 + $0x28] sm:$0xff] %vm234_vm0, %v720_v26 }
 0x1f5   : > { %v638_v5 = vpop.permute.xlu1 %637  ;;  %v673_v15 = vpop.permute.xlu0 %672 }
 0x1f6   : > { %v715_v36 = vadd.f32 %v638_v5, %v619_v31  ;;  %v722_v27 = vadd.f32 %v673_v15, %v626_v35 }
 0x1f8   : > { %731 = vst.msk [vmem:[%s1183_s27] sm:$0xff] %vm234_vm0, %v715_v36  ;;  %738 = vst.msk [vmem:[%s1183_s27 + $0x38] sm:$0xff] %vm234_vm0, %v722_v27 }
 0x1f9   : > { %v648_v0 = vpop.permute.xlu1 %647  ;;  %v683_v13 = vpop.permute.xlu0 %682 }
 0x1fa   : > { %v717_v39 = vadd.f32 %v648_v0, %v621_v38  ;;  %v724_v33 = vadd.f32 %v683_v13, %v628_v9 }
 0x1fc   : > { %733 = vst.msk [vmem:[%s1183_s27 + $0x10] sm:$0xff] %vm234_vm0, %v717_v39  ;;  %740 = vst.msk [vmem:[%s1183_s27 + $0x48] sm:$0xff] %vm234_vm0, %v724_v33 }
 0x1fd   : > { %v658_v1 = vpop.permute.xlu1 %657  ;;  %v693_v17 = vpop.permute.xlu0 %692 }
 0x1fe   : > { %v719_v44 = vadd.f32 %v658_v1, %v623_v50  ;;  %v726_v42 = vadd.f32 %v693_v17, %v630_v4 }
 0x200   : > { %735 = vst.msk [vmem:[%s1183_s27 + $0x20] sm:$0xff] %vm234_vm0, %v719_v44  ;;  %742 = vst.msk [vmem:[%s1183_s27 + $0x58] sm:$0xff] %vm234_vm0, %v726_v42 }
 0x201   : > { %v668_v8 = vpop.permute.xlu1 %667  ;;  %v703_v21 = vpop.permute.xlu0 %702 }
 0x202   : > { %v721_v56 = vadd.f32 %v668_v8, %v625_v43  ;;  %v728_v60 = vadd.f32 %v703_v21, %v632_v47 }
 0x204   : > { %737 = vst.msk [vmem:[%s1183_s27 + $0x30] sm:$0xff] %vm234_vm0, %v721_v56  ;;  %744 = vst.msk [vmem:[%s1183_s27 + $0x68] sm:$0xff] %vm234_vm0, %v728_v60 }
 0x205   : > { %v678_v12 = vpop.permute.xlu1 %677  ;;  %v713_v25 = vpop.permute.xlu0 %712 }
 0x206   : > { %v723_v49 = vadd.f32 %v678_v12, %v627_v45  ;;  %v730_v52 = vadd.f32 %v713_v25, %v634_v40 }
 0x208   : > { %739 = vst.msk [vmem:[%s1183_s27 + $0x40] sm:$0xff] %vm234_vm0, %v723_v49  ;;  %746 = vst.msk [vmem:[%s1183_s27 + $0x78] sm:$0xff] %vm234_vm0, %v730_v52 }
 0x209   : > { %v688_v14 = vpop.permute.xlu1 %687 }
 0x20a   : > { %v725_v16 = vadd.f32 %v688_v14, %v629_v59 }
 0x20c   : > { %741 = vst.msk [vmem:[%s1183_s27 + $0x50] sm:$0xff] %vm234_vm0, %v725_v16 }
 0x20d   : > { %v698_v10 = vpop.permute.xlu1 %697 }
 0x20e   : > { %v727_v18 = vadd.f32 %v698_v10, %v631_v29 }
 0x210   : > { %743 = vst.msk [vmem:[%s1183_s27 + $0x60] sm:$0xff] %vm234_vm0, %v727_v18 }
 0x211   : > { %v708_v54 = vpop.permute.xlu1 %707 }
 0x212   : > { %v729_v55 = vadd.f32 %v708_v54, %v633_v53 }
 0x214   : > { %745 = vst.msk [vmem:[%s1183_s27 + $0x70] sm:$0xff] %vm234_vm0, %v729_v55 }
 0x215 PF: > { %s13_s12 = sadd.s32 1, %s891_s12  }
 0x216   : > { %p10_p4 = scmp.ge.s32.totalorder %s13_s12, 4  }
 0x218   :  { %12 = sbr.rel (!%p10_p4) target bundleno = 1 (0x1), region = 68 }

</bundles_post_ra>
